<compile_context>
chip_gen: v5e
topology: v5e:2x2
jax: 0.10.0
libtpu: 0.0.40
codegen_flags: <defaults>
</compile_context>

<pallas_src>
import functools

import jax
import jax.numpy as jnp
from jax import lax
from jax.experimental import pallas as pl
from jax.experimental.pallas import tpu as pltpu

ALPHA = 0.25
GAMMA = 2
_LANE_CANDIDATES = (512, 256, 128)   # lane-dense slab widths (multiples of 128)
_CHUNK_CANDIDATES = (128, 64, 32, 16, 8)  # rows per in-kernel compute chunk


def _default_max_tm():
    """Rows per grid block, per generation.

    v6e / v7x: 2048 rows x 512 lanes f32 = 4 MiB per input block -> 16 MiB of
    double-buffered inputs, safely under their 32 MiB scoped-VMEM default.
    Everything else (incl. v5e's 16 MiB default): 1024 rows -> 8 MiB total.
    """
    try:
        kind = jax.devices()[0].device_kind.lower()
    except Exception:  # pragma: no cover - defensive; default to the safe size
        kind = ""
    if "v6" in kind or "v7" in kind:
        return 2048
    return 1024


def _focal_terms(x, t, alpha, gamma):
    """Elementwise BCE term and focal-weight term (f32 in, f32 out).

    Exact algebraic simplification of the PyTorch module:
      p       = (1 + t) / 2
      bce     = -(p log x + (1-p) log(1-x)) = -0.5*((1+t) log x + (1-t) log(1-x))
      q       = 1 - p_t = 0.5*(1+t) - t*t
      alpha_t = (2*alpha - 1)*t + (1 - alpha)
      w       = alpha_t * q**gamma * |t|
    """
    tp1 = 1.0 + t
    tm1 = 1.0 - t
    # PyTorch binary_cross_entropy clamps each log term at -100.
    log_x = jnp.maximum(jnp.log(x), -100.0)
    log_1mx = jnp.maximum(jnp.log(1.0 - x), -100.0)
    bce = -0.5 * (tp1 * log_x + tm1 * log_1mx)

    q = 0.5 * tp1 - t * t            # == 1 - p_t
    if gamma == 2:
        w = q * q                    # stays on the 4-wide VALU, never the EUP
    elif isinstance(gamma, int):
        w = lax.integer_pow(q, gamma)
    else:
        w = q ** gamma
    if alpha >= 0:
        alpha_t = (2.0 * alpha - 1.0) * t + (1.0 - alpha)
        w = alpha_t * w
    w = w * jnp.abs(t)
    return bce, w


def _focal_partials_kernel(x_ref, t_ref, bce_out_ref, w_out_ref, *,
                           alpha, gamma, tm, chunk, lane_w, rows_total, masked):
    """One grid block of `tm` rows -> (8, lane_w) partial sums of bce and w."""
    i = pl.program_id(0)
    nchunks = tm // chunk            # static

    def chunk_partials(c, mask_rows):
        start = pl.multiple_of(c * chunk, chunk)
        x = x_ref[pl.ds(start, chunk), :].astype(jnp.float32)
        t = t_ref[pl.ds(start, chunk), :].astype(jnp.float32)
        bce, w = _focal_terms(x, t, alpha, gamma)
        if mask_rows:
            # Rows >= rows_total hold undefined (Pallas-padded) data; zero their
            # contribution with a SELECT so NaN/Inf from the logs can't leak.
            row = lax.broadcasted_iota(jnp.int32, (chunk, lane_w), 0)
            valid = (i * tm + c * chunk + row) < rows_total
            bce = jnp.where(valid, bce, 0.0)
            w = jnp.where(valid, w, 0.0)
        # Lane-resident fold: groups of 8 rows land on top of each other.
        # Pure cross-vreg VPU adds -- no XLU tree, no scalar broadcast.
        return (bce.reshape(chunk // 8, 8, lane_w).sum(axis=0),
                w.reshape(chunk // 8, 8, lane_w).sum(axis=0))

    def run(mask_rows):
        def body(c, carry):
            acc_b, acc_w = carry
            pb, pw = chunk_partials(c, mask_rows)
            return acc_b + pb, acc_w + pw
        zero = jnp.zeros((8, lane_w), jnp.float32)
        acc_b, acc_w = lax.fori_loop(0, nchunks, body, (zero, zero))
        bce_out_ref[0] = acc_b
        w_out_ref[0] = acc_w

    if not masked:
        run(False)
    else:
        # Only the LAST grid block can run past rows_total; every other block
        # takes the mask-free path (no iota / compare / select in the hot loop).
        last = pl.num_programs(0) - 1

        @pl.when(i != last)
        def _():
            run(False)

        @pl.when(i == last)
        def _():
            run(True)


def _partial_sums_pallas(x2, t2, rows, lane_w, alpha, gamma):
    """Run the streaming-reduction kernel over a (rows, lane_w) slab."""
    max_tm = _default_max_tm()
    # tm: multiple of 8 so the in-kernel (chunk//8, 8, lane_w) fold is exact,
    # capped per-generation so double-buffered inputs stay inside scoped VMEM.
    tm = min(max_tm, ((rows + 7) // 8) * 8)
    chunk = next(c for c in _CHUNK_CANDIDATES if tm % c == 0)
    num_blocks = pl.cdiv(rows, tm)
    masked = (rows % tm) != 0

    kernel = functools.partial(
        _focal_partials_kernel,
        alpha=float(alpha), gamma=gamma, tm=tm, chunk=chunk,
        lane_w=lane_w, rows_total=rows, masked=masked)

    part_shape = jax.ShapeDtypeStruct((num_blocks, 8, lane_w), jnp.float32)
    out_spec = pl.BlockSpec((1, 8, lane_w), lambda i: (i, 0, 0))

    bce_parts, w_parts = pl.pallas_call(
        kernel,
        out_shape=(part_shape, part_shape),
        grid_spec=pltpu.PrefetchScalarGridSpec(
            num_scalar_prefetch=0,
            grid=(num_blocks,),
            in_specs=[
                pl.BlockSpec((tm, lane_w), lambda i: (i, 0)),
                pl.BlockSpec((tm, lane_w), lambda i: (i, 0)),
            ],
            out_specs=(out_spec, out_spec),
        ),
        compiler_params=pltpu.CompilerParams(
            dimension_semantics=("parallel",)),
    )(x2, t2)

    # Tiny cross-lane finish in plain JAX (num_blocks * 8 * lane_w elements).
    return jnp.sum(bce_parts), jnp.sum(w_parts)


def focal_loss(inputs, targets, alpha=ALPHA, gamma=GAMMA, reduction="mean"):
    """Pallas implementation of FocalLoss.forward (reduction 'mean' or 'sum').

    Inputs/targets may be f32 or bf16 (bf16 halves HBM traffic; all math is
    done after an in-kernel f32 upcast).
    """
    assert inputs.shape == targets.shape
    n = inputs.size

    # Largest lane width (multiple of 128) that divides the element count: the
    # kernel operand is then a PURE reshape of the whole contiguous array --
    # no slice, no padded copy feeding the pallas_call.
    lane_w = next((c for c in _LANE_CANDIDATES if n % c == 0), None)

    if lane_w is not None:
        rows = n // lane_w
        x2 = inputs.reshape(rows, lane_w)
        t2 = targets.reshape(rows, lane_w)
        bce_sum, w_sum = _partial_sums_pallas(x2, t2, rows, lane_w,
                                              float(alpha), gamma)
    else:
        # TODO(synk): element counts not divisible by 128 fall back to plain
        # JAX; a manual-DMA (memory_space=pl.ANY) ragged-tail kernel could
        # cover this without the hidden slice copy.
        xf = inputs.reshape(-1).astype(jnp.float32)
        tf = targets.reshape(-1).astype(jnp.float32)
        bce, w = _focal_terms(xf, tf, float(alpha), gamma)
        bce_sum, w_sum = jnp.sum(bce), jnp.sum(w)

    ce_mean = bce_sum / n   # scalar, as F.binary_cross_entropy(reduction='mean')
    if reduction == "mean":
        return ce_mean * (w_sum / n)
    elif reduction == "sum":
        return ce_mean * w_sum
    else:
        # TODO(synk): reduction='none' needs a per-element output tensor; not
        # needed for the module default.
        raise NotImplementedError("reduction='none' not implemented")


def _focal_loss_ref(inputs, targets, alpha=ALPHA, gamma=GAMMA):
    """Pure-JAX reference mirroring the PyTorch module (reduction='mean')."""
    inputs = inputs.astype(jnp.float32)
    targets = targets.astype(jnp.float32)
    p = (targets + 1.0) / 2.0
    log_x = jnp.maximum(jnp.log(inputs), -100.0)
    log_1mx = jnp.maximum(jnp.log(1.0 - inputs), -100.0)
    ce_loss = jnp.mean(-(p * log_x + (1.0 - p) * log_1mx))
    p_t = p * targets + (1.0 - p) * (1.0 - targets)
    loss = ce_loss * (1.0 - p_t) ** gamma
    alpha_t = alpha * targets + (1.0 - alpha) * (1.0 - targets)
    loss = alpha_t * loss
    loss = loss * jnp.abs(targets)
    return jnp.mean(loss)


if __name__ == "__main__":
    key = jax.random.PRNGKey(0)
    k1, k2 = jax.random.split(key)

    # NCHW-shaped example (as a detection loss would see): batch=2, channels=4, 16x16.
    shape = (2, 4, 16, 16)
    inputs = jax.random.uniform(k1, shape, jnp.float32, minval=0.01, maxval=0.99)
    targets = jax.random.uniform(k2, shape, jnp.float32, minval=-1.0, maxval=1.0)

    out = jax.jit(focal_loss)(inputs, targets)
    out = jax.block_until_ready(out)

    ref = _focal_loss_ref(inputs, targets)
    assert jnp.allclose(out, ref, rtol=1e-5, atol=1e-6), (out, ref)

    print("KERNEL_OK")
</pallas_src>

<mosaic_0001>
module attributes {stable_mosaic.version = 11 : i64} {
  func.func @_focal_partials_kernel(%arg0: i32, %arg1: memref<8x512xf32, #tpu.memory_space<vmem>>, %arg2: memref<8x512xf32, #tpu.memory_space<vmem>>, %arg3: memref<1x8x512xf32, #tpu.memory_space<vmem>>, %arg4: memref<1x8x512xf32, #tpu.memory_space<vmem>>) attributes {dimension_semantics = [#tpu.dimension_semantics<parallel>], iteration_bounds = array<i64: 1>, scalar_prefetch = 0 : i64, scratch_operands = 0 : i64, tpu.core_type = #tpu.core_type<tc>, window_params = [{transform_indices = @transform_0, window_bounds = array<i64: 8, 512>}, {transform_indices = @transform_1, window_bounds = array<i64: 8, 512>}, {transform_indices = @transform_2, window_bounds = array<i64: 1, 8, 512>}, {transform_indices = @transform_3, window_bounds = array<i64: 1, 8, 512>}]} {
    %c0_i32 = arith.constant 0 : i32
    %0 = arith.cmpi ne, %arg0, %c0_i32 : i32
    %1 = arith.extui %0 : i1 to i32
    %c0_i32_0 = arith.constant 0 : i32
    %2 = arith.cmpi ne, %1, %c0_i32_0 : i32
    scf.if %2 {
      %cst = arith.constant 0.000000e+00 : f32
      %6 = vector.broadcast %cst : f32 to vector<8x512xf32>
      %c0_i32_3 = arith.constant 0 : i32
      %c8_i32 = arith.constant 8 : i32
      %7 = arith.muli %c0_i32_3, %c8_i32 : i32
      %8 = tpu.assume_multiple %7, 8 : i32
      %9 = arith.index_cast %8 : i32 to index
      %c0 = arith.constant 0 : index
      %10 = vector.load %arg1[%9, %c0] : memref<8x512xf32, #tpu.memory_space<vmem>>, vector<8x512xf32>
      %11 = arith.index_cast %8 : i32 to index
      %c0_4 = arith.constant 0 : index
      %12 = vector.load %arg2[%11, %c0_4] : memref<8x512xf32, #tpu.memory_space<vmem>>, vector<8x512xf32>
      %cst_5 = arith.constant 1.000000e+00 : f32
      %13 = vector.broadcast %cst_5 : f32 to vector<8x512xf32>
      %14 = arith.addf %13, %12 : vector<8x512xf32>
      %cst_6 = arith.constant 1.000000e+00 : f32
      %15 = vector.broadcast %cst_6 : f32 to vector<8x512xf32>
      %16 = arith.subf %15, %12 : vector<8x512xf32>
      %17 = math.log %10 : vector<8x512xf32>
      %cst_7 = arith.constant -1.000000e+02 : f32
      %18 = vector.broadcast %cst_7 : f32 to vector<8x512xf32>
      %19 = arith.maximumf %17, %18 : vector<8x512xf32>
      %cst_8 = arith.constant 1.000000e+00 : f32
      %20 = vector.broadcast %cst_8 : f32 to vector<8x512xf32>
      %21 = arith.subf %20, %10 : vector<8x512xf32>
      %22 = math.log %21 : vector<8x512xf32>
      %cst_9 = arith.constant -1.000000e+02 : f32
      %23 = vector.broadcast %cst_9 : f32 to vector<8x512xf32>
      %24 = arith.maximumf %22, %23 : vector<8x512xf32>
      %25 = arith.mulf %14, %19 : vector<8x512xf32>
      %26 = arith.mulf %16, %24 : vector<8x512xf32>
      %27 = arith.addf %25, %26 : vector<8x512xf32>
      %cst_10 = arith.constant -5.000000e-01 : f32
      %28 = vector.broadcast %cst_10 : f32 to vector<8x512xf32>
      %29 = arith.mulf %28, %27 : vector<8x512xf32>
      %cst_11 = arith.constant 5.000000e-01 : f32
      %30 = vector.broadcast %cst_11 : f32 to vector<8x512xf32>
      %31 = arith.mulf %30, %14 : vector<8x512xf32>
      %32 = arith.mulf %12, %12 : vector<8x512xf32>
      %33 = arith.subf %31, %32 : vector<8x512xf32>
      %34 = arith.mulf %33, %33 : vector<8x512xf32>
      %cst_12 = arith.constant -5.000000e-01 : f32
      %35 = vector.broadcast %cst_12 : f32 to vector<8x512xf32>
      %36 = arith.mulf %35, %12 : vector<8x512xf32>
      %cst_13 = arith.constant 7.500000e-01 : f32
      %37 = vector.broadcast %cst_13 : f32 to vector<8x512xf32>
      %38 = arith.addf %36, %37 : vector<8x512xf32>
      %39 = arith.mulf %38, %34 : vector<8x512xf32>
      %40 = math.absf %12 : vector<8x512xf32>
      %41 = arith.mulf %39, %40 : vector<8x512xf32>
      %42 = vector.shape_cast %29 : vector<8x512xf32> to vector<1x8x512xf32>
      %cst_14 = arith.constant dense<0.000000e+00> : vector<8x512xf32>
      %43 = vector.multi_reduction <add>, %42, %cst_14 [0] : vector<1x8x512xf32> to vector<8x512xf32>
      %44 = vector.shape_cast %41 : vector<8x512xf32> to vector<1x8x512xf32>
      %cst_15 = arith.constant dense<0.000000e+00> : vector<8x512xf32>
      %45 = vector.multi_reduction <add>, %44, %cst_15 [0] : vector<1x8x512xf32> to vector<8x512xf32>
      %46 = arith.addf %6, %43 : vector<8x512xf32>
      %47 = arith.addf %6, %45 : vector<8x512xf32>
      %c1_i32 = arith.constant 1 : i32
      %c0_16 = arith.constant 0 : index
      %c0_17 = arith.constant 0 : index
      %c0_18 = arith.constant 0 : index
      %48 = vector.load %arg3[%c0_16, %c0_17, %c0_18] : memref<1x8x512xf32, #tpu.memory_space<vmem>>, vector<1x8x512xf32>
      %49 = vector.shape_cast %48 : vector<1x8x512xf32> to vector<8x512xf32>
      %50 = vector.shape_cast %46 : vector<8x512xf32> to vector<1x8x512xf32>
      tpu.vector_store %arg3[%c0_16, %c0_17, %c0_18], %50 {strides = array<i32>} : memref<1x8x512xf32, #tpu.memory_space<vmem>>, vector<1x8x512xf32>,
      %c0_19 = arith.constant 0 : index
      %c0_20 = arith.constant 0 : index
      %c0_21 = arith.constant 0 : index
      %51 = vector.load %arg4[%c0_19, %c0_20, %c0_21] : memref<1x8x512xf32, #tpu.memory_space<vmem>>, vector<1x8x512xf32>
      %52 = vector.shape_cast %51 : vector<1x8x512xf32> to vector<8x512xf32>
      %53 = vector.shape_cast %47 : vector<8x512xf32> to vector<1x8x512xf32>
      tpu.vector_store %arg4[%c0_19, %c0_20, %c0_21], %53 {strides = array<i32>} : memref<1x8x512xf32, #tpu.memory_space<vmem>>, vector<1x8x512xf32>,
    } else {
    }
    %c0_i32_1 = arith.constant 0 : i32
    %3 = arith.cmpi eq, %arg0, %c0_i32_1 : i32
    %4 = arith.extui %3 : i1 to i32
    %c0_i32_2 = arith.constant 0 : i32
    %5 = arith.cmpi ne, %4, %c0_i32_2 : i32
    scf.if %5 {
      %cst = arith.constant 0.000000e+00 : f32
      %6 = vector.broadcast %cst : f32 to vector<8x512xf32>
      %c0_i32_3 = arith.constant 0 : i32
      %c8_i32 = arith.constant 8 : i32
      %7 = arith.muli %c0_i32_3, %c8_i32 : i32
      %8 = tpu.assume_multiple %7, 8 : i32
      %9 = arith.index_cast %8 : i32 to index
      %c0 = arith.constant 0 : index
      %10 = vector.load %arg1[%9, %c0] : memref<8x512xf32, #tpu.memory_space<vmem>>, vector<8x512xf32>
      %11 = arith.index_cast %8 : i32 to index
      %c0_4 = arith.constant 0 : index
      %12 = vector.load %arg2[%11, %c0_4] : memref<8x512xf32, #tpu.memory_space<vmem>>, vector<8x512xf32>
      %cst_5 = arith.constant 1.000000e+00 : f32
      %13 = vector.broadcast %cst_5 : f32 to vector<8x512xf32>
      %14 = arith.addf %13, %12 : vector<8x512xf32>
      %cst_6 = arith.constant 1.000000e+00 : f32
      %15 = vector.broadcast %cst_6 : f32 to vector<8x512xf32>
      %16 = arith.subf %15, %12 : vector<8x512xf32>
      %17 = math.log %10 : vector<8x512xf32>
      %cst_7 = arith.constant -1.000000e+02 : f32
      %18 = vector.broadcast %cst_7 : f32 to vector<8x512xf32>
      %19 = arith.maximumf %17, %18 : vector<8x512xf32>
      %cst_8 = arith.constant 1.000000e+00 : f32
      %20 = vector.broadcast %cst_8 : f32 to vector<8x512xf32>
      %21 = arith.subf %20, %10 : vector<8x512xf32>
      %22 = math.log %21 : vector<8x512xf32>
      %cst_9 = arith.constant -1.000000e+02 : f32
      %23 = vector.broadcast %cst_9 : f32 to vector<8x512xf32>
      %24 = arith.maximumf %22, %23 : vector<8x512xf32>
      %25 = arith.mulf %14, %19 : vector<8x512xf32>
      %26 = arith.mulf %16, %24 : vector<8x512xf32>
      %27 = arith.addf %25, %26 : vector<8x512xf32>
      %cst_10 = arith.constant -5.000000e-01 : f32
      %28 = vector.broadcast %cst_10 : f32 to vector<8x512xf32>
      %29 = arith.mulf %28, %27 : vector<8x512xf32>
      %cst_11 = arith.constant 5.000000e-01 : f32
      %30 = vector.broadcast %cst_11 : f32 to vector<8x512xf32>
      %31 = arith.mulf %30, %14 : vector<8x512xf32>
      %32 = arith.mulf %12, %12 : vector<8x512xf32>
      %33 = arith.subf %31, %32 : vector<8x512xf32>
      %34 = arith.mulf %33, %33 : vector<8x512xf32>
      %cst_12 = arith.constant -5.000000e-01 : f32
      %35 = vector.broadcast %cst_12 : f32 to vector<8x512xf32>
      %36 = arith.mulf %35, %12 : vector<8x512xf32>
      %cst_13 = arith.constant 7.500000e-01 : f32
      %37 = vector.broadcast %cst_13 : f32 to vector<8x512xf32>
      %38 = arith.addf %36, %37 : vector<8x512xf32>
      %39 = arith.mulf %38, %34 : vector<8x512xf32>
      %40 = math.absf %12 : vector<8x512xf32>
      %41 = arith.mulf %39, %40 : vector<8x512xf32>
      %42 = tpu.iota {dimensions = array<i32: 0>} : vector<8x512xi32>
      %c8_i32_14 = arith.constant 8 : i32
      %43 = arith.muli %arg0, %c8_i32_14 : i32
      %c8_i32_15 = arith.constant 8 : i32
      %44 = arith.muli %c0_i32_3, %c8_i32_15 : i32
      %45 = arith.addi %43, %44 : i32
      %46 = vector.broadcast %45 : i32 to vector<8x512xi32>
      %47 = arith.addi %46, %42 : vector<8x512xi32>
      %c4_i32 = arith.constant 4 : i32
      %48 = vector.broadcast %c4_i32 : i32 to vector<8x512xi32>
      %49 = arith.cmpi slt, %47, %48 : vector<8x512xi32>
      %cst_16 = arith.constant 0.000000e+00 : f32
      %50 = vector.broadcast %cst_16 : f32 to vector<8x512xf32>
      %51 = arith.select %49, %29, %50 : vector<8x512xi1>, vector<8x512xf32>
      %cst_17 = arith.constant 0.000000e+00 : f32
      %52 = vector.broadcast %cst_17 : f32 to vector<8x512xf32>
      %53 = arith.select %49, %41, %52 : vector<8x512xi1>, vector<8x512xf32>
      %54 = vector.shape_cast %51 : vector<8x512xf32> to vector<1x8x512xf32>
      %cst_18 = arith.constant dense<0.000000e+00> : vector<8x512xf32>
      %55 = vector.multi_reduction <add>, %54, %cst_18 [0] : vector<1x8x512xf32> to vector<8x512xf32>
      %56 = vector.shape_cast %53 : vector<8x512xf32> to vector<1x8x512xf32>
      %cst_19 = arith.constant dense<0.000000e+00> : vector<8x512xf32>
      %57 = vector.multi_reduction <add>, %56, %cst_19 [0] : vector<1x8x512xf32> to vector<8x512xf32>
      %58 = arith.addf %6, %55 : vector<8x512xf32>
      %59 = arith.addf %6, %57 : vector<8x512xf32>
      %c1_i32 = arith.constant 1 : i32
      %c0_20 = arith.constant 0 : index
      %c0_21 = arith.constant 0 : index
      %c0_22 = arith.constant 0 : index
      %60 = vector.load %arg3[%c0_20, %c0_21, %c0_22] : memref<1x8x512xf32, #tpu.memory_space<vmem>>, vector<1x8x512xf32>
      %61 = vector.shape_cast %60 : vector<1x8x512xf32> to vector<8x512xf32>
      %62 = vector.shape_cast %58 : vector<8x512xf32> to vector<1x8x512xf32>
      tpu.vector_store %arg3[%c0_20, %c0_21, %c0_22], %62 {strides = array<i32>} : memref<1x8x512xf32, #tpu.memory_space<vmem>>, vector<1x8x512xf32>,
      %c0_23 = arith.constant 0 : index
      %c0_24 = arith.constant 0 : index
      %c0_25 = arith.constant 0 : index
      %63 = vector.load %arg4[%c0_23, %c0_24, %c0_25] : memref<1x8x512xf32, #tpu.memory_space<vmem>>, vector<1x8x512xf32>
      %64 = vector.shape_cast %63 : vector<1x8x512xf32> to vector<8x512xf32>
      %65 = vector.shape_cast %59 : vector<8x512xf32> to vector<1x8x512xf32>
      tpu.vector_store %arg4[%c0_23, %c0_24, %c0_25], %65 {strides = array<i32>} : memref<1x8x512xf32, #tpu.memory_space<vmem>>, vector<1x8x512xf32>,
    } else {
    }
    return
  }
  func.func @transform_0(%arg0: i32) -> (i32, i32) {
    %c0_i32 = arith.constant 0 : i32
    %c0_i32_0 = arith.constant 0 : i32
    return %arg0, %c0_i32 : i32, i32
  }
  func.func @transform_1(%arg0: i32) -> (i32, i32) {
    %c0_i32 = arith.constant 0 : i32
    %c0_i32_0 = arith.constant 0 : i32
    return %arg0, %c0_i32 : i32, i32
  }
  func.func @transform_2(%arg0: i32) -> (i32, i32, i32) {
    %c0_i32 = arith.constant 0 : i32
    %c0_i32_0 = arith.constant 0 : i32
    %c0_i32_1 = arith.constant 0 : i32
    return %arg0, %c0_i32, %c0_i32_0 : i32, i32, i32
  }
  func.func @transform_3(%arg0: i32) -> (i32, i32, i32) {
    %c0_i32 = arith.constant 0 : i32
    %c0_i32_0 = arith.constant 0 : i32
    %c0_i32_1 = arith.constant 0 : i32
    return %arg0, %c0_i32, %c0_i32_0 : i32, i32, i32
  }
}

</mosaic_0001>

<bundles_post_ra>
// kernel: focal_loss.1
= control target key start
LH: loop header
LB: loop body
LE: loop exit
PB: predicated region body
PF: predicated region fallthrough
CT: control target
= control target key end

     0   :  { %v285_v16 = vlaneseq  ;;  %s494_s0 = inlined_call_operand.vmem [shape: f32[4,512], index: 0, kind: input, shape index: {}]   ;;  %s495_s1 = inlined_call_operand.vmem [shape: f32[4,512], index: 1, kind: input, shape index: {}]   ;;  %s496_s2 = inlined_call_operand.vmem [shape: f32[1,8,512], index: 2, kind: output, shape index: {0}]   ;;  %s497_s3 = inlined_call_operand.vmem [shape: f32[1,8,512], index: 3, kind: output, shape index: {1}]  }
   0x1   :  { %v187_v0 = vld [vmem:[%s494_s0] sm:$0xff]  ;;  %v189_v2 = vld [vmem:[%s494_s0 + $0x10] sm:$0xff]  ;;  %v188_v6 = vld [vmem:[%s494_s0 + $0x8] sm:$0xff] }
   0x2   :  { %v411_v1 = vld [vmem:[%s495_s1] sm:$0xff]  ;;  %369 = vlog2.f32 %v187_v0  ;;  %v217_v3 = vsub.f32 1.0, %v187_v0  ;;  %v419_v4 = vld [vmem:[%s495_s1 + $0x10] sm:$0xff]  ;;  %v219_v7 = vsub.f32 1.0, %v189_v2  ;;  %v190_v11 = vld [vmem:[%s494_s0 + $0x18] sm:$0xff]  ;;  %v218_v13 = vsub.f32 1.0, %v188_v6 }
   0x3   :  { %v197_v5 = vadd.f32 1.0, %v411_v1  ;;  %371 = vlog2.f32 %v189_v2  ;;  %v253_v9 = vmul.f32 %v411_v1, %v411_v1  ;;  %v199_v10 = vadd.f32 1.0, %v419_v4  ;;  %v434_v12 = vld [vmem:[%s495_s1 + $0x8] sm:$0xff]  ;;  %v444_v25 = vld [vmem:[%s495_s1 + $0x18] sm:$0xff] }
   0x4   :  { %373 = vlog2.f32 %v217_v3  ;;  %v255_v15 = vmul.f32 %v419_v4, %v419_v4  ;;  %v201_v18 = vsub.f32 1.0, %v411_v1  ;;  %v203_v19 = vsub.f32 1.0, %v419_v4 }
   0x5   :  { %v249_v8 = vmul.f32 0.5, %v197_v5  ;;  %375 = vlog2.f32 %v188_v6  ;;  %v251_v14 = vmul.f32 0.5, %v199_v10  ;;  %v220_v20 = vsub.f32 1.0, %v190_v11 }
   0x6   :  { %377 = vlog2.f32 %v219_v7  ;;  %v198_v24 = vadd.f32 1.0, %v434_v12  ;;  %v202_v28 = vsub.f32 1.0, %v434_v12  ;;  %v254_v29 = vmul.f32 %v434_v12, %v434_v12 }
   0x7   :  { %379 = vlog2.f32 %v218_v13  ;;  %v257_v23 = vsub.f32 %v249_v8, %v253_v9  ;;  %v259_v33 = vsub.f32 %v251_v14, %v255_v15  ;;  %v200_v38 = vadd.f32 1.0, %v444_v25 }
   0x8   :  { %v370_v17 = vpop.eup %369  ;;  %381 = vlog2.f32 %v190_v11  ;;  %v250_v34 = vmul.f32 0.5, %v198_v24  ;;  %v204_v39 = vsub.f32 1.0, %v444_v25  ;;  %v256_v47 = vmul.f32 %v444_v25, %v444_v25 }
   0x9   :  { %v372_v21 = vpop.eup %371  ;;  %v206_v22 = vmul.f32 0.6931472, %v370_v17  ;;  %383 = vlog2.f32 %v220_v20  ;;  %v261_v42 = vmul.f32 %v257_v23, %v257_v23  ;;  %v252_v46 = vmul.f32 0.5, %v200_v38 }
   0xa   :  { %v374_v26 = vpop.eup %373  ;;  %v210_v27 = vmul.f32 0.6931472, %v372_v21  ;;  %v265_v48 = vmul.f32 -0.5, %v411_v1  ;;  %v258_v56 = vsub.f32 %v250_v34, %v254_v29  ;;  %v267_v58 = vmul.f32 -0.5, %v419_v4 }
   0xb   :  { %v376_v30 = vpop.eup %375  ;;  %v213_v31 = vmax.f32 %v206_v22, -100.0  ;;  %v222_v32 = vmul.f32 0.6931472, %v374_v26  ;;  %v260_v0 = vsub.f32 %v252_v46, %v256_v47  ;;  %v266_v3 = vmul.f32 -0.5, %v434_v12 }
   0xc   :  { %v378_v35 = vpop.eup %377  ;;  %v215_v36 = vmax.f32 %v210_v27, -100.0  ;;  %v208_v37 = vmul.f32 0.6931472, %v376_v30  ;;  %v269_v2 = vadd.f32 0.75, %v265_v48  ;;  %v263_v9 = vmul.f32 %v259_v33, %v259_v33 }
   0xd   :  { %v229_v40 = vmax.f32 %v222_v32, -100.0  ;;  %v233_v41 = vmul.f32 %v213_v31, %v197_v5  ;;  %v226_v43 = vmul.f32 0.6931472, %v378_v35  ;;  %v380_v44 = vpop.eup %379  ;;  %v271_v11 = vadd.f32 0.75, %v267_v58 }
   0xe   :  { %v214_v45 = vmax.f32 %v208_v37, -100.0  ;;  %v382_v49 = vpop.eup %381  ;;  %v235_v52 = vmul.f32 %v215_v36, %v199_v10  ;;  %v224_v53 = vmul.f32 0.6931472, %v380_v44  ;;  %v268_v13 = vmul.f32 -0.5, %v444_v25 }
   0xf   :  { %v237_v50 = vmul.f32 %v229_v40, %v201_v18  ;;  %v231_v51 = vmax.f32 %v226_v43, -100.0  ;;  %v384_v54 = vpop.eup %383  ;;  %v212_v57 = vmul.f32 0.6931472, %v382_v49  ;;  %v262_v18 = vmul.f32 %v258_v56, %v258_v56 }
  0x10   :  { %v234_v55 = vmul.f32 %v214_v45, %v198_v24  ;;  %v230_v61 = vmax.f32 %v224_v53, -100.0  ;;  %v228_v62 = vmul.f32 0.6931472, %v384_v54  ;;  %v277_v20 = vand.u32 2147483647, %v411_v1 }
  0x11   :  { %v241_v59 = vadd.f32 %v237_v50, %v233_v41  ;;  %v239_v60 = vmul.f32 %v231_v51, %v203_v19  ;;  %v216_v63 = vmax.f32 %v212_v57, -100.0  ;;  %v264_v19 = vmul.f32 %v260_v0, %v260_v0 }
  0x12   :  { %v238_v7 = vmul.f32 %v230_v61, %v202_v28  ;;  %v232_v8 = vmax.f32 %v228_v62, -100.0  ;;  %v273_v23 = vmul.f32 %v269_v2, %v261_v42  ;;  %v270_v24 = vadd.f32 0.75, %v266_v3 }
  0x13   :  { %v245_v5 = vmul.f32 -0.5, %v241_v59  ;;  %v243_v6 = vadd.f32 %v239_v60, %v235_v52  ;;  %v236_v10 = vmul.f32 %v216_v63, %v200_v38  ;;  %v275_v26 = vmul.f32 %v271_v11, %v263_v9 }
  0x14   :  { %v242_v15 = vadd.f32 %v238_v7, %v234_v55  ;;  %v240_v17 = vmul.f32 %v232_v8, %v204_v39  ;;  %v279_v27 = vand.u32 2147483647, %v419_v4  ;;  %v272_v28 = vadd.f32 0.75, %v268_v13 }
  0x15   :  { %295 = vst [vmem:[#allocation1] ss:$2 sm:$0xff] %v245_v5  ;;  %v247_v14 = vmul.f32 -0.5, %v243_v6  ;;  %v286_v29 = vshrl.u32 %v285_v16, 7  ;;  %v281_v31 = vmul.f32 %v277_v20, %v273_v23  ;;  %v274_v32 = vmul.f32 %v270_v24, %v262_v18 }
  0x16   :  { %v246_v21 = vmul.f32 -0.5, %v242_v15  ;;  %v244_v22 = vadd.f32 %v240_v17, %v236_v10  ;;  %v278_v33 = vand.u32 2147483647, %v434_v12  ;;  %v283_v34 = vmul.f32 %v279_v27, %v275_v26 }
  0x17   :  { %297 = vst [vmem:[#allocation1 + $0x1] ss:$2 sm:$0xff] %v247_v14  ;;  %v276_v1 = vmul.f32 %v272_v28, %v264_v19  ;;  %v280_v35 = vand.u32 2147483647, %v444_v25  ;;  %vm290_vm0 = vcmp.lt.s32.totalorder %v286_v29, 4 }
  0x18   :  { %299 = vst [vmem:[#allocation1 + $0x10] ss:$2 sm:$0xff] %v246_v21  ;;  %v248_v30 = vmul.f32 -0.5, %v244_v22  ;;  %v282_v38 = vmul.f32 %v278_v33, %v274_v32 }
  0x19   :  { %v284_v16 = vmul.f32 %v280_v35, %v276_v1 }
  0x1a   :  { %301 = vst [vmem:[#allocation1 + $0x11] ss:$2 sm:$0xff] %v248_v30 }
  0x1e   :  { %v302_v36 = vld.sshfl [vmem:[#allocation1] sm:$0xff pattern:$0x75316420]  ;;  %v303_v37 = vld.sshfl [vmem:[#allocation1 + $0x8] sm:$0xff pattern:$0x75316420] }
  0x1f   :  { %318 = vst [vmem:[#allocation1] ss:$2 sm:$0xff] %v281_v31  ;;  %v310_v4 = vsel %vm290_vm0, %v302_v36, 0.0  ;;  %v311_v39 = vsel %vm290_vm0, %v303_v37, 0.0 }
  0x20   :  { %320 = vst [vmem:[#allocation1 + $0x1] ss:$2 sm:$0xff] %v283_v34 }
  0x21   :  { %353 = vst [vmem:[%s496_s2] sm:$0xff] %v310_v4  ;;  %v304_v12 = vld.sshfl [vmem:[#allocation1 + $0x10] sm:$0xff pattern:$0x75316420]  ;;  %v305_v40 = vld.sshfl [vmem:[#allocation1 + $0x18] sm:$0xff pattern:$0x75316420] }
  0x22   :  { %322 = vst [vmem:[#allocation1 + $0x10] ss:$2 sm:$0xff] %v282_v38  ;;  %v312_v25 = vsel %vm290_vm0, %v304_v12, 0.0  ;;  %v313_v41 = vsel %vm290_vm0, %v305_v40, 0.0 }
  0x23   :  { %324 = vst [vmem:[#allocation1 + $0x11] ss:$2 sm:$0xff] %v284_v16 }
  0x24   :  { %354 = vst [vmem:[%s496_s2 + $0x8] sm:$0xff] %v311_v39 }
  0x25   :  { %355 = vst [vmem:[%s496_s2 + $0x10] sm:$0xff] %v312_v25 }
  0x26   :  { %356 = vst [vmem:[%s496_s2 + $0x18] sm:$0xff] %v313_v41 }
  0x27   :  { %v325_v42 = vld.sshfl [vmem:[#allocation1] sm:$0xff pattern:$0x75316420]  ;;  %v326_v44 = vld.sshfl [vmem:[#allocation1 + $0x8] sm:$0xff pattern:$0x75316420] }
  0x28   :  { %v333_v43 = vsel %vm290_vm0, %v325_v42, 0.0  ;;  %v334_v45 = vsel %vm290_vm0, %v326_v44, 0.0 }
  0x29   :  { %357 = vst [vmem:[%s497_s3] sm:$0xff] %v333_v43 }
  0x2a   :  { %358 = vst [vmem:[%s497_s3 + $0x8] sm:$0xff] %v334_v45  ;;  %v327_v46 = vld.sshfl [vmem:[#allocation1 + $0x10] sm:$0xff pattern:$0x75316420] }
  0x2b   :  { %v328_v47 = vld.sshfl [vmem:[#allocation1 + $0x18] sm:$0xff pattern:$0x75316420]  ;;  %v335_v48 = vsel %vm290_vm0, %v327_v46, 0.0 }
  0x2c   :  { %v336_v49 = vsel %vm290_vm0, %v328_v47, 0.0  ;;  %359 = vst [vmem:[%s497_s3 + $0x10] sm:$0xff] %v335_v48 }
  0x2d   :  { %360 = vst [vmem:[%s497_s3 + $0x18] sm:$0xff] %v336_v49 }

</bundles_post_ra>
